<compile_context>
chip_gen: v6e
topology: v6e:2x2x1
jax: 0.10.0
libtpu: 0.0.40
codegen_flags: <defaults>
</compile_context>

<pallas_src>
import jax
import jax.numpy as jnp
import numpy as np
from jax.experimental import pallas as pl
from jax.experimental.pallas import tpu as pltpu

# ---------------- small-shape config (analog of the real module) ------------
B = 2            # real batch
B_PAD = 8        # padded batch (full sublane group)
S = 8            # text sequence length
VOCAB = 100      # synthetic vocab
H_TEXT = 32      # analog of roberta hidden_size (768)
C = 4            # image channels
HS = 16          # image spatial H = W
HW = HS * HS
F_IMG = 64       # analog of resnet50 fc.in_features (2048)
D = 64           # analog of the 512-d projections
A = 32           # analog of attention hidden 256 (reference only; elided in kernel)
HC = 32          # analog of classifier hidden 256
NUM_CLASSES = 3
LANES = 128      # every packed slab is 128 lanes wide
N_W = 3          # weight slabs: [txtfc+imgb], [imgfc], [cls1+cls2]
N_B = 4          # bias vregs (pre-broadcast over sublanes)
LOGIT_LANE = 64  # logits live in lanes 64..66 of the output slab

# Packed x layout (lanes):  [0:32) = text CLS hidden, [32:36) = image GAP, rest 0
# Combined-feature layout:  text features lanes [0:64), image features lanes [64:128)


# ----------------------------- Pallas kernel --------------------------------
def fused_kernel(x_ref, b_ref, w_hbm, out_ref, w_vmem, sem):
    f32 = jnp.float32

    # Kick off all weight-slab DMAs (HBM -> VMEM) immediately; wait on each slab
    # right before its dot so later fetches hide under earlier MXU work.
    copies = [pltpu.make_async_copy(w_hbm.at[k], w_vmem.at[k], sem.at[k])
              for k in range(N_W)]
    for cp in copies:
        cp.start()

    x = x_ref[...]                                             # [B_PAD, 128]
    lane = jax.lax.broadcasted_iota(jnp.int32, (B_PAD, LANES), 1)
    is_text_lane = lane < D                                    # hoisted lane mask

    # Slab 0: fused text_fc (-> lanes 0..63) + image-backbone head (-> lanes 64..127)
    copies[0].wait()
    y = jnp.dot(x, w_vmem[0], preferred_element_type=f32) + b_ref[0]
    h = jnp.maximum(y, 0.0)   # ReLU; only lanes 64..127 (img_hid) feed slab 1

    # Slab 1: image_model.fc — packed rows 64..127 -> cols 64..127, so the
    # (unwanted) ReLU of the text half multiplies zero weight rows.
    copies[1].wait()
    img_feat = jnp.dot(h, w_vmem[1], preferred_element_type=f32) + b_ref[1]

    # torch.cat((text, image), dim=1): halves live in disjoint lanes, so concat
    # is a lane select (VPU), not a shuffle/copy.
    combined = jnp.where(is_text_lane, y, img_feat)            # [B_PAD, 128]

    # NOTE: the module's attention block (Linear(1024,256)->Tanh->Linear(256,1)
    # -> softmax(dim=1)) is the exact identity here because the attention score
    # is [B, 1] and softmax runs over that size-1 axis (== 1.0). Elided.  If the
    # attention axis ever gains extent > 1 this elision is invalid.

    # Slab 2: fused classifier — L1 at rows 0..127 -> cols 0..31, L2 at rows
    # 0..31 -> cols 64..66.  Both dots hit the same slab; cross terms land only
    # in lanes never read (slab rows 64..66 x cols 64..66 are zero).
    copies[2].wait()
    c1 = jnp.maximum(
        jnp.dot(combined, w_vmem[2], preferred_element_type=f32) + b_ref[2], 0.0)
    # lane-dense [B_PAD, 128] store; logits occupy lanes 64..66
    out_ref[...] = jnp.dot(c1, w_vmem[2], preferred_element_type=f32) + b_ref[3]


def multimodal_forward(x_pack, b_pack, w_pack):
    vmem = pl.BlockSpec(memory_space=pltpu.MemorySpace.VMEM)
    out = pl.pallas_call(
        fused_kernel,
        out_shape=jax.ShapeDtypeStruct((B_PAD, LANES), jnp.float32),
        in_specs=[vmem, vmem, pl.BlockSpec(memory_space=pl.ANY)],
        out_specs=vmem,
        scratch_shapes=[
            pltpu.VMEM((N_W, LANES, LANES), jnp.float32),
            pltpu.SemaphoreType.DMA((N_W,)),
        ],
    )(x_pack, b_pack, w_pack)
    return out[:B, LOGIT_LANE:LOGIT_LANE + NUM_CLASSES]


# ------------------------------ parameter init -------------------------------
def init_params(key):
    ks = jax.random.split(key, 16)
    sc = 0.05
    return {
        "w_imgb":   sc * jax.random.normal(ks[0], (C, F_IMG), jnp.float32),
        "b_imgb":   sc * jax.random.normal(ks[1], (F_IMG,), jnp.float32),
        "w_imgfc":  sc * jax.random.normal(ks[2], (F_IMG, D), jnp.float32),
        "b_imgfc":  sc * jax.random.normal(ks[3], (D,), jnp.float32),
        "w_txtfc":  sc * jax.random.normal(ks[4], (H_TEXT, D), jnp.float32),
        "b_txtfc":  sc * jax.random.normal(ks[5], (D,), jnp.float32),
        # attention params: used only by the reference (kernel elides the
        # mathematically-dead branch).
        "w_att1_t": sc * jax.random.normal(ks[6], (D, A), jnp.float32),
        "w_att1_i": sc * jax.random.normal(ks[7], (D, A), jnp.float32),
        "b_att1":   sc * jax.random.normal(ks[8], (A,), jnp.float32),
        "w_att2":   sc * jax.random.normal(ks[9], (1, A), jnp.float32),
        "b_att2":   sc * jax.random.normal(ks[10], (1,), jnp.float32),
        "w_cls1_t": sc * jax.random.normal(ks[11], (D, HC), jnp.float32),
        "w_cls1_i": sc * jax.random.normal(ks[12], (D, HC), jnp.float32),
        "b_cls1":   sc * jax.random.normal(ks[13], (HC,), jnp.float32),
        "w_cls2":   sc * jax.random.normal(ks[14], (HC, NUM_CLASSES), jnp.float32),
        "b_cls2":   sc * jax.random.normal(ks[15], (NUM_CLASSES,), jnp.float32),
    }


def pack_params(p):
    """Pack live weights/biases into 3 co-packed 128x128 slabs + pre-broadcast biases."""
    W = np.zeros((N_W, LANES, LANES), np.float32)
    # Slab 0: text_fc (rows 0..31 -> cols 0..63) + image-backbone head
    #         (rows 32..35 -> cols 64..127).  Disjoint rows AND cols.
    W[0, 0:H_TEXT, 0:D] = np.asarray(p["w_txtfc"])
    W[0, 32:32 + C, D:D + F_IMG] = np.asarray(p["w_imgb"])
    # Slab 1: image fc, repacked rows 64..127 -> cols 64..127
    W[1, D:D + F_IMG, 64:64 + D] = np.asarray(p["w_imgfc"])
    # Slab 2: classifier L1 (rows 0..63 text half, 64..127 image half -> cols 0..31)
    #         + classifier L2 (rows 0..31 -> cols 64..66)
    W[2, 0:D, 0:HC] = np.asarray(p["w_cls1_t"])
    W[2, D:2 * D, 0:HC] = np.asarray(p["w_cls1_i"])
    W[2, 0:HC, LOGIT_LANE:LOGIT_LANE + NUM_CLASSES] = np.asarray(p["w_cls2"])

    # Pre-broadcast biases: each layer adds a full [B_PAD, 128] vreg (no
    # broadcast_in_dim on the serial post-MXU path).
    Bv = np.zeros((N_B, B_PAD, LANES), np.float32)
    Bv[0, :, 0:D] = np.asarray(p["b_txtfc"])
    Bv[0, :, D:D + F_IMG] = np.asarray(p["b_imgb"])
    Bv[1, :, 64:64 + D] = np.asarray(p["b_imgfc"])
    Bv[2, :, 0:HC] = np.asarray(p["b_cls1"])
    Bv[3, :, LOGIT_LANE:LOGIT_LANE + NUM_CLASSES] = np.asarray(p["b_cls2"])
    return jnp.asarray(W), jnp.asarray(Bv)


def pack_inputs(txt_cls, image_input):
    """GAP hoisted out of the kernel; pack both modalities into one [B_PAD,128] slab."""
    img_gap = image_input.reshape(B, C, HW).mean(-1)          # [B, C]
    x = jnp.zeros((B_PAD, LANES), jnp.float32)
    x = x.at[:B, 0:H_TEXT].set(txt_cls)
    x = x.at[:B, 32:32 + C].set(img_gap)
    return x


def reference_forward(txt_cls, image_input, p):
    """Pure-JAX reference mirroring the PyTorch forward (fused branch), incl.
    the full attention block (which is the identity because softmax is over a
    size-1 dim)."""
    img_gap = image_input.reshape(B, C, HW).mean(-1)
    img_hid = jnp.maximum(img_gap @ p["w_imgb"] + p["b_imgb"], 0.0)
    img_feat = img_hid @ p["w_imgfc"] + p["b_imgfc"]
    txt_feat = txt_cls @ p["w_txtfc"] + p["b_txtfc"]
    combined = jnp.concatenate([txt_feat, img_feat], axis=1)          # [B, 2D]
    w_att1 = jnp.concatenate([p["w_att1_t"], p["w_att1_i"]], axis=0)  # [2D, A]
    a1 = jnp.tanh(combined @ w_att1 + p["b_att1"])
    att = a1 @ p["w_att2"].T + p["b_att2"]                            # [B, 1]
    att_w = jax.nn.softmax(att, axis=1)                               # exactly 1.0
    attended = combined * att_w
    w_cls1 = jnp.concatenate([p["w_cls1_t"], p["w_cls1_i"]], axis=0)
    c1 = jnp.maximum(attended @ w_cls1 + p["b_cls1"], 0.0)
    return c1 @ p["w_cls2"] + p["b_cls2"]


if __name__ == "__main__":
    key = jax.random.PRNGKey(0)
    k_emb, k_ids, k_img, k_par = jax.random.split(key, 4)

    # synthetic inputs matching the module's forward signature
    input_ids = jax.random.randint(k_ids, (B, S), 0, VOCAB, dtype=jnp.int32)
    attention_mask = jnp.ones((B, S), dtype=jnp.int32)     # unused by the stand-in
    image_input = jax.random.normal(k_img, (B, C, HS, HS), jnp.float32)   # NCHW

    # text backbone stand-in: embedding lookup -> CLS token [:, 0, :]
    emb_table = 0.05 * jax.random.normal(k_emb, (VOCAB, H_TEXT), jnp.float32)
    txt_cls = emb_table[input_ids][:, 0, :]                 # [B, H_TEXT]

    p = init_params(k_par)
    w_pack, b_pack = pack_params(p)
    x_pack = pack_inputs(txt_cls, image_input)

    out = multimodal_forward(x_pack, b_pack, w_pack)
    out = jax.block_until_ready(out)

    ref = reference_forward(txt_cls, image_input, p)
    np.testing.assert_allclose(np.asarray(out), np.asarray(ref), rtol=1e-5, atol=1e-5)

    print("KERNEL_OK")
</pallas_src>

<mosaic_0001>
module attributes {stable_mosaic.version = 11 : i64} {
  func.func @fused_kernel(%arg0: memref<8x128xf32, #tpu.memory_space<vmem>>, %arg1: memref<4x8x128xf32, #tpu.memory_space<vmem>>, %arg2: memref<3x128x128xf32, #tpu.memory_space<any>>, %arg3: memref<8x128xf32, #tpu.memory_space<vmem>>, %arg4: memref<3x128x128xf32, #tpu.memory_space<vmem>>, %arg5: memref<3x!tpu.dma_semaphore, #tpu.memory_space<semaphore_mem>>) attributes {dimension_semantics = [], scalar_prefetch = 0 : i64, scratch_operands = 2 : i64, tpu.core_type = #tpu.core_type<tc>} {
    %c0_i32 = arith.constant 0 : i32
    %c0_i32_0 = arith.constant 0 : i32
    %c0_i32_1 = arith.constant 0 : i32
    %c0_i32_2 = arith.constant 0 : i32
    %c0_i32_3 = arith.constant 0 : i32
    %0 = tpu.memref_slice %arg2[%c0_i32, %c0_i32_2, %c0_i32_3] : memref<3x128x128xf32, #tpu.memory_space<any>> -> memref<1x128x128xf32, #tpu.memory_space<any>>
    %1 = tpu.memref_squeeze %0 : memref<1x128x128xf32, #tpu.memory_space<any>> -> memref<128x128xf32, #tpu.memory_space<any>>
    %c0_i32_4 = arith.constant 0 : i32
    %c0_i32_5 = arith.constant 0 : i32
    %2 = tpu.memref_slice %arg4[%c0_i32_0, %c0_i32_4, %c0_i32_5] : memref<3x128x128xf32, #tpu.memory_space<vmem>> -> memref<1x128x128xf32, #tpu.memory_space<vmem>>
    %3 = tpu.memref_squeeze %2 : memref<1x128x128xf32, #tpu.memory_space<vmem>> -> memref<128x128xf32, #tpu.memory_space<vmem>>
    %4 = tpu.memref_slice %arg5[%c0_i32_1] : memref<3x!tpu.dma_semaphore, #tpu.memory_space<semaphore_mem>> -> memref<1x!tpu.dma_semaphore, #tpu.memory_space<semaphore_mem>>
    %5 = tpu.memref_squeeze %4 : memref<1x!tpu.dma_semaphore, #tpu.memory_space<semaphore_mem>> -> memref<!tpu.dma_semaphore, #tpu.memory_space<semaphore_mem>>
    tpu.enqueue_dma source(%1 : memref<128x128xf32, #tpu.memory_space<any>>) target(%3 : memref<128x128xf32, #tpu.memory_space<vmem>>) target_semaphore(%5 : memref<!tpu.dma_semaphore, #tpu.memory_space<semaphore_mem>>)
    %c1_i32 = arith.constant 1 : i32
    %c1_i32_6 = arith.constant 1 : i32
    %c1_i32_7 = arith.constant 1 : i32
    %c0_i32_8 = arith.constant 0 : i32
    %c0_i32_9 = arith.constant 0 : i32
    %6 = tpu.memref_slice %arg2[%c1_i32, %c0_i32_8, %c0_i32_9] : memref<3x128x128xf32, #tpu.memory_space<any>> -> memref<1x128x128xf32, #tpu.memory_space<any>>
    %7 = tpu.memref_squeeze %6 : memref<1x128x128xf32, #tpu.memory_space<any>> -> memref<128x128xf32, #tpu.memory_space<any>>
    %c0_i32_10 = arith.constant 0 : i32
    %c0_i32_11 = arith.constant 0 : i32
    %8 = tpu.memref_slice %arg4[%c1_i32_6, %c0_i32_10, %c0_i32_11] : memref<3x128x128xf32, #tpu.memory_space<vmem>> -> memref<1x128x128xf32, #tpu.memory_space<vmem>>
    %9 = tpu.memref_squeeze %8 : memref<1x128x128xf32, #tpu.memory_space<vmem>> -> memref<128x128xf32, #tpu.memory_space<vmem>>
    %10 = tpu.memref_slice %arg5[%c1_i32_7] : memref<3x!tpu.dma_semaphore, #tpu.memory_space<semaphore_mem>> -> memref<1x!tpu.dma_semaphore, #tpu.memory_space<semaphore_mem>>
    %11 = tpu.memref_squeeze %10 : memref<1x!tpu.dma_semaphore, #tpu.memory_space<semaphore_mem>> -> memref<!tpu.dma_semaphore, #tpu.memory_space<semaphore_mem>>
    tpu.enqueue_dma source(%7 : memref<128x128xf32, #tpu.memory_space<any>>) target(%9 : memref<128x128xf32, #tpu.memory_space<vmem>>) target_semaphore(%11 : memref<!tpu.dma_semaphore, #tpu.memory_space<semaphore_mem>>)
    %c2_i32 = arith.constant 2 : i32
    %c2_i32_12 = arith.constant 2 : i32
    %c2_i32_13 = arith.constant 2 : i32
    %c0_i32_14 = arith.constant 0 : i32
    %c0_i32_15 = arith.constant 0 : i32
    %12 = tpu.memref_slice %arg2[%c2_i32, %c0_i32_14, %c0_i32_15] : memref<3x128x128xf32, #tpu.memory_space<any>> -> memref<1x128x128xf32, #tpu.memory_space<any>>
    %13 = tpu.memref_squeeze %12 : memref<1x128x128xf32, #tpu.memory_space<any>> -> memref<128x128xf32, #tpu.memory_space<any>>
    %c0_i32_16 = arith.constant 0 : i32
    %c0_i32_17 = arith.constant 0 : i32
    %14 = tpu.memref_slice %arg4[%c2_i32_12, %c0_i32_16, %c0_i32_17] : memref<3x128x128xf32, #tpu.memory_space<vmem>> -> memref<1x128x128xf32, #tpu.memory_space<vmem>>
    %15 = tpu.memref_squeeze %14 : memref<1x128x128xf32, #tpu.memory_space<vmem>> -> memref<128x128xf32, #tpu.memory_space<vmem>>
    %16 = tpu.memref_slice %arg5[%c2_i32_13] : memref<3x!tpu.dma_semaphore, #tpu.memory_space<semaphore_mem>> -> memref<1x!tpu.dma_semaphore, #tpu.memory_space<semaphore_mem>>
    %17 = tpu.memref_squeeze %16 : memref<1x!tpu.dma_semaphore, #tpu.memory_space<semaphore_mem>> -> memref<!tpu.dma_semaphore, #tpu.memory_space<semaphore_mem>>
    tpu.enqueue_dma source(%13 : memref<128x128xf32, #tpu.memory_space<any>>) target(%15 : memref<128x128xf32, #tpu.memory_space<vmem>>) target_semaphore(%17 : memref<!tpu.dma_semaphore, #tpu.memory_space<semaphore_mem>>)
    %c0 = arith.constant 0 : index
    %c0_18 = arith.constant 0 : index
    %18 = vector.load %arg0[%c0, %c0_18] : memref<8x128xf32, #tpu.memory_space<vmem>>, vector<8x128xf32>
    %19 = tpu.iota {dimensions = array<i32: 1>} : vector<8x128xi32>
    %c64_i32 = arith.constant 64 : i32
    %20 = vector.broadcast %c64_i32 : i32 to vector<8x128xi32>
    %21 = arith.cmpi slt, %19, %20 : vector<8x128xi32>
    %c0_i32_19 = arith.constant 0 : i32
    %c0_i32_20 = arith.constant 0 : i32
    %c0_i32_21 = arith.constant 0 : i32
    %c0_i32_22 = arith.constant 0 : i32
    %c0_i32_23 = arith.constant 0 : i32
    %22 = tpu.memref_slice %arg2[%c0_i32_19, %c0_i32_22, %c0_i32_23] : memref<3x128x128xf32, #tpu.memory_space<any>> -> memref<1x128x128xf32, #tpu.memory_space<any>>
    %23 = tpu.memref_squeeze %22 : memref<1x128x128xf32, #tpu.memory_space<any>> -> memref<128x128xf32, #tpu.memory_space<any>>
    %c0_i32_24 = arith.constant 0 : i32
    %c0_i32_25 = arith.constant 0 : i32
    %24 = tpu.memref_slice %arg4[%c0_i32_20, %c0_i32_24, %c0_i32_25] : memref<3x128x128xf32, #tpu.memory_space<vmem>> -> memref<1x128x128xf32, #tpu.memory_space<vmem>>
    %25 = tpu.memref_squeeze %24 : memref<1x128x128xf32, #tpu.memory_space<vmem>> -> memref<128x128xf32, #tpu.memory_space<vmem>>
    %26 = tpu.memref_slice %arg5[%c0_i32_21] : memref<3x!tpu.dma_semaphore, #tpu.memory_space<semaphore_mem>> -> memref<1x!tpu.dma_semaphore, #tpu.memory_space<semaphore_mem>>
    %27 = tpu.memref_squeeze %26 : memref<1x!tpu.dma_semaphore, #tpu.memory_space<semaphore_mem>> -> memref<!tpu.dma_semaphore, #tpu.memory_space<semaphore_mem>>
    tpu.wait_dma2 semaphore(%27 : memref<!tpu.dma_semaphore, #tpu.memory_space<semaphore_mem>>) src(%23 : memref<128x128xf32, #tpu.memory_space<any>>) dst(%25 : memref<128x128xf32, #tpu.memory_space<vmem>>)
    %c0_26 = arith.constant 0 : index
    %c0_27 = arith.constant 0 : index
    %c0_28 = arith.constant 0 : index
    %28 = vector.load %arg4[%c0_26, %c0_27, %c0_28] : memref<3x128x128xf32, #tpu.memory_space<vmem>>, vector<1x128x128xf32>
    %29 = vector.shape_cast %28 : vector<1x128x128xf32> to vector<128x128xf32>
    %cst = arith.constant dense<0.000000e+00> : vector<8x128xf32>
    %30 = tpu.matmul %18, %29, %cst {dimension_numbers = #tpu.dot_dimension_numbers<[1], [0], [0], [1], [0, 0, 1, 1], [], []>} : vector<8x128xf32>, vector<128x128xf32>, vector<8x128xf32> -> vector<8x128xf32>
    %c0_29 = arith.constant 0 : index
    %c0_30 = arith.constant 0 : index
    %c0_31 = arith.constant 0 : index
    %31 = vector.load %arg1[%c0_29, %c0_30, %c0_31] : memref<4x8x128xf32, #tpu.memory_space<vmem>>, vector<1x8x128xf32>
    %32 = vector.shape_cast %31 : vector<1x8x128xf32> to vector<8x128xf32>
    %33 = arith.addf %30, %32 : vector<8x128xf32>
    %cst_32 = arith.constant 0.000000e+00 : f32
    %34 = vector.broadcast %cst_32 : f32 to vector<8x128xf32>
    %35 = arith.maximumf %33, %34 : vector<8x128xf32>
    %c1_i32_33 = arith.constant 1 : i32
    %c1_i32_34 = arith.constant 1 : i32
    %c1_i32_35 = arith.constant 1 : i32
    %c0_i32_36 = arith.constant 0 : i32
    %c0_i32_37 = arith.constant 0 : i32
    %36 = tpu.memref_slice %arg2[%c1_i32_33, %c0_i32_36, %c0_i32_37] : memref<3x128x128xf32, #tpu.memory_space<any>> -> memref<1x128x128xf32, #tpu.memory_space<any>>
    %37 = tpu.memref_squeeze %36 : memref<1x128x128xf32, #tpu.memory_space<any>> -> memref<128x128xf32, #tpu.memory_space<any>>
    %c0_i32_38 = arith.constant 0 : i32
    %c0_i32_39 = arith.constant 0 : i32
    %38 = tpu.memref_slice %arg4[%c1_i32_34, %c0_i32_38, %c0_i32_39] : memref<3x128x128xf32, #tpu.memory_space<vmem>> -> memref<1x128x128xf32, #tpu.memory_space<vmem>>
    %39 = tpu.memref_squeeze %38 : memref<1x128x128xf32, #tpu.memory_space<vmem>> -> memref<128x128xf32, #tpu.memory_space<vmem>>
    %40 = tpu.memref_slice %arg5[%c1_i32_35] : memref<3x!tpu.dma_semaphore, #tpu.memory_space<semaphore_mem>> -> memref<1x!tpu.dma_semaphore, #tpu.memory_space<semaphore_mem>>
    %41 = tpu.memref_squeeze %40 : memref<1x!tpu.dma_semaphore, #tpu.memory_space<semaphore_mem>> -> memref<!tpu.dma_semaphore, #tpu.memory_space<semaphore_mem>>
    tpu.wait_dma2 semaphore(%41 : memref<!tpu.dma_semaphore, #tpu.memory_space<semaphore_mem>>) src(%37 : memref<128x128xf32, #tpu.memory_space<any>>) dst(%39 : memref<128x128xf32, #tpu.memory_space<vmem>>)
    %c1 = arith.constant 1 : index
    %c0_40 = arith.constant 0 : index
    %c0_41 = arith.constant 0 : index
    %42 = vector.load %arg4[%c1, %c0_40, %c0_41] : memref<3x128x128xf32, #tpu.memory_space<vmem>>, vector<1x128x128xf32>
    %43 = vector.shape_cast %42 : vector<1x128x128xf32> to vector<128x128xf32>
    %cst_42 = arith.constant dense<0.000000e+00> : vector<8x128xf32>
    %44 = tpu.matmul %35, %43, %cst_42 {dimension_numbers = #tpu.dot_dimension_numbers<[1], [0], [0], [1], [0, 0, 1, 1], [], []>} : vector<8x128xf32>, vector<128x128xf32>, vector<8x128xf32> -> vector<8x128xf32>
    %c1_43 = arith.constant 1 : index
    %c0_44 = arith.constant 0 : index
    %c0_45 = arith.constant 0 : index
    %45 = vector.load %arg1[%c1_43, %c0_44, %c0_45] : memref<4x8x128xf32, #tpu.memory_space<vmem>>, vector<1x8x128xf32>
    %46 = vector.shape_cast %45 : vector<1x8x128xf32> to vector<8x128xf32>
    %47 = arith.addf %44, %46 : vector<8x128xf32>
    %48 = arith.select %21, %33, %47 : vector<8x128xi1>, vector<8x128xf32>
    %c2_i32_46 = arith.constant 2 : i32
    %c2_i32_47 = arith.constant 2 : i32
    %c2_i32_48 = arith.constant 2 : i32
    %c0_i32_49 = arith.constant 0 : i32
    %c0_i32_50 = arith.constant 0 : i32
    %49 = tpu.memref_slice %arg2[%c2_i32_46, %c0_i32_49, %c0_i32_50] : memref<3x128x128xf32, #tpu.memory_space<any>> -> memref<1x128x128xf32, #tpu.memory_space<any>>
    %50 = tpu.memref_squeeze %49 : memref<1x128x128xf32, #tpu.memory_space<any>> -> memref<128x128xf32, #tpu.memory_space<any>>
    %c0_i32_51 = arith.constant 0 : i32
    %c0_i32_52 = arith.constant 0 : i32
    %51 = tpu.memref_slice %arg4[%c2_i32_47, %c0_i32_51, %c0_i32_52] : memref<3x128x128xf32, #tpu.memory_space<vmem>> -> memref<1x128x128xf32, #tpu.memory_space<vmem>>
    %52 = tpu.memref_squeeze %51 : memref<1x128x128xf32, #tpu.memory_space<vmem>> -> memref<128x128xf32, #tpu.memory_space<vmem>>
    %53 = tpu.memref_slice %arg5[%c2_i32_48] : memref<3x!tpu.dma_semaphore, #tpu.memory_space<semaphore_mem>> -> memref<1x!tpu.dma_semaphore, #tpu.memory_space<semaphore_mem>>
    %54 = tpu.memref_squeeze %53 : memref<1x!tpu.dma_semaphore, #tpu.memory_space<semaphore_mem>> -> memref<!tpu.dma_semaphore, #tpu.memory_space<semaphore_mem>>
    tpu.wait_dma2 semaphore(%54 : memref<!tpu.dma_semaphore, #tpu.memory_space<semaphore_mem>>) src(%50 : memref<128x128xf32, #tpu.memory_space<any>>) dst(%52 : memref<128x128xf32, #tpu.memory_space<vmem>>)
    %c2 = arith.constant 2 : index
    %c0_53 = arith.constant 0 : index
    %c0_54 = arith.constant 0 : index
    %55 = vector.load %arg4[%c2, %c0_53, %c0_54] : memref<3x128x128xf32, #tpu.memory_space<vmem>>, vector<1x128x128xf32>
    %56 = vector.shape_cast %55 : vector<1x128x128xf32> to vector<128x128xf32>
    %cst_55 = arith.constant dense<0.000000e+00> : vector<8x128xf32>
    %57 = tpu.matmul %48, %56, %cst_55 {dimension_numbers = #tpu.dot_dimension_numbers<[1], [0], [0], [1], [0, 0, 1, 1], [], []>} : vector<8x128xf32>, vector<128x128xf32>, vector<8x128xf32> -> vector<8x128xf32>
    %c2_56 = arith.constant 2 : index
    %c0_57 = arith.constant 0 : index
    %c0_58 = arith.constant 0 : index
    %58 = vector.load %arg1[%c2_56, %c0_57, %c0_58] : memref<4x8x128xf32, #tpu.memory_space<vmem>>, vector<1x8x128xf32>
    %59 = vector.shape_cast %58 : vector<1x8x128xf32> to vector<8x128xf32>
    %60 = arith.addf %57, %59 : vector<8x128xf32>
    %cst_59 = arith.constant 0.000000e+00 : f32
    %61 = vector.broadcast %cst_59 : f32 to vector<8x128xf32>
    %62 = arith.maximumf %60, %61 : vector<8x128xf32>
    %c2_60 = arith.constant 2 : index
    %c0_61 = arith.constant 0 : index
    %c0_62 = arith.constant 0 : index
    %63 = vector.load %arg4[%c2_60, %c0_61, %c0_62] : memref<3x128x128xf32, #tpu.memory_space<vmem>>, vector<1x128x128xf32>
    %64 = vector.shape_cast %63 : vector<1x128x128xf32> to vector<128x128xf32>
    %cst_63 = arith.constant dense<0.000000e+00> : vector<8x128xf32>
    %65 = tpu.matmul %62, %64, %cst_63 {dimension_numbers = #tpu.dot_dimension_numbers<[1], [0], [0], [1], [0, 0, 1, 1], [], []>} : vector<8x128xf32>, vector<128x128xf32>, vector<8x128xf32> -> vector<8x128xf32>
    %c3 = arith.constant 3 : index
    %c0_64 = arith.constant 0 : index
    %c0_65 = arith.constant 0 : index
    %66 = vector.load %arg1[%c3, %c0_64, %c0_65] : memref<4x8x128xf32, #tpu.memory_space<vmem>>, vector<1x8x128xf32>
    %67 = vector.shape_cast %66 : vector<1x8x128xf32> to vector<8x128xf32>
    %68 = arith.addf %65, %67 : vector<8x128xf32>
    %c0_66 = arith.constant 0 : index
    %c0_67 = arith.constant 0 : index
    %69 = vector.load %arg3[%c0_66, %c0_67] : memref<8x128xf32, #tpu.memory_space<vmem>>, vector<8x128xf32>
    tpu.vector_store %arg3[%c0_66, %c0_67], %68 {strides = array<i32>} : memref<8x128xf32, #tpu.memory_space<vmem>>, vector<8x128xf32>,
    return
  }
}

</mosaic_0001>

<bundles_post_ra>
// kernel: tpu_custom_call.1
= control target key start
LH: loop header
LB: loop body
LE: loop exit
PB: predicated region body
PF: predicated region fallthrough
CT: control target
= control target key end

     0   :  { %8 = vsyncpa [#allocation5], 0  ;;  %s964_s0 = inlined_call_operand.hbm [shape: f32[8,128], index: 0, kind: input, shape index: {}]   ;;  %s965_s1 = inlined_call_operand.hbm [shape: f32[4,8,128], index: 1, kind: input, shape index: {}]   ;;  %s966_s2 = inlined_call_operand.hbm [shape: f32[3,128,128], index: 2, kind: input, shape index: {}]   ;;  %s967_s3 = inlined_call_operand.hbm [shape: f32[8,128], index: 3, kind: output, shape index: {}]  }
   0x1   :  { %9 = vsyncpa [#allocation8], 0 }
   0x2   :  { %10 = vsyncpa [#allocation6], 0  ;;  %s823_s12 = smov [#allocation4]   ;;  %s824_s14 = smov [#allocation7]  }
   0x3   :  { %s17_s13 = sshll.u32 %s823_s12, 4  ;;  %s26_s15 = sshll.u32 %s824_s14, 4  ;;  %s18_s13 = int_to_ptr.vmem [resolvable:$true] %s17_s13  ;;  %s27_s15 = int_to_ptr.vmem [resolvable:$true] %s26_s15 }
   0x4   :  { %s693_s16 = scalar_lea.vmem %s18_s13, 128  ;;  %p698_p1 = scmp.lt.s32.totalorder %s18_s13, %s18_s13 }
   0x5   :  { %p694_p0 = scmp.ne.s32.totalorder %s18_s13, %s693_s16  ;;  %p699_p2 = scmp.lt.s32.totalorder %s693_s16, %s693_s16 }
   0x7   :  { %p700_p3 = por %p699_p2, %p698_p1 }
   0x9   :  { %p701_p4 = pnand %p700_p3, %p694_p0 }
   0xb   :  { %704 = shalt.err (!%p701_p4)
}
   0xc   :  { %20 = dma.hbm_to_vmem [thread:$0]  %s964_s0, 128, %s18_s13, [#allocation5]  }
   0xd   :  { %s713_s19 = scalar_lea.vmem %s27_s15, 512  ;;  %p718_p6 = scmp.lt.s32.totalorder %s27_s15, %s27_s15 }
   0xe   :  { %p714_p5 = scmp.ne.s32.totalorder %s27_s15, %s713_s19  ;;  %p719_p7 = scmp.lt.s32.totalorder %s713_s19, %s713_s19 }
  0x10   :  { %p720_p8 = por %p719_p7, %p718_p6 }
  0x12   :  { %p721_p9 = pnand %p720_p8, %p714_p5 }
  0x14   :  { %724 = shalt.err (!%p721_p9)
}
  0x15   :  { %s825_s20 = smov 128   ;;  %s826_s21 = smov 8  }
  0x16   :  { %32 = dma.hbm_to_vmem [thread:$0]  %s965_s1, 512, %s27_s15, [#allocation8], %s825_s20, %s825_s20, %s826_s21  }
  0x17   :  { %811 = dma.done.wait [#allocation5], 128  }
  0x18   :  { %812 = vsyncadd [#allocation5], 4294967168 }
  0x19   :  { %813 = dma.done.wait [#allocation8], 512  }
  0x1a   :  { %814 = vsyncadd [#allocation8], 4294966784  ;;  %s50_s0 = scalar_lea.hbm %s966_s2, 2048  ;;  %v79_v0 = vlaneseq  ;;  %s827_s26 = smov [#allocation2]  }
  0x1b   :  { %s46_s27 = sshll.u32 %s827_s26, 4  ;;  %s828_s28 = smov [#allocation2 + $0x80]   ;;  %s862_s27 = int_to_ptr.vmem [resolvable:$true] %s46_s27 }
  0x1c   :  { %s60_s29 = sshll.u32 %s828_s28, 4  ;;  %v864_v1 = vand.u32 127, %v79_v0  ;;  %s733_s1 = scalar_lea.vmem %s862_s27, 2048  ;;  %s61_s29 = int_to_ptr.vmem [resolvable:$true] %s60_s29 }
  0x1d   :  { %p734_p10 = scmp.ne.s32.totalorder %s862_s27, %s733_s1  ;;  %s737_s30 = scalar_lea.vmem %s862_s27, 6144 }
  0x1e   :  { %p738_p11 = scmp.lt.s32.totalorder %s862_s27, %s862_s27  ;;  %p739_p12 = scmp.lt.s32.totalorder %s737_s30, %s733_s1 }
  0x20   :  { %p740_p13 = por %p739_p12, %p738_p11 }
  0x22   :  { %p741_p0 = pnand %p740_p13, %p734_p10 }
  0x24   :  { %744 = shalt.err (!%p741_p0)  }
  0x25   :  { %49 = dma.hbm_to_vmem [thread:$0]  %s966_s2, 2048, %s862_s27, [#allocation3]  ;;  %vm81_vm0 = vcmp.lt.s32.totalorder %v864_v1, 64 }
  0x26   :  { %s755_s6 = scalar_lea.vmem %s61_s29, 2048  ;;  %p760_p2 = scmp.lt.s32.totalorder %s61_s29, %s862_s27 }
  0x27   :  { %p756_p1 = scmp.ne.s32.totalorder %s61_s29, %s755_s6  ;;  %p761_p3 = scmp.lt.s32.totalorder %s737_s30, %s755_s6 }
  0x29   :  { %p762_p4 = por %p761_p3, %p760_p2 }
  0x2b   :  { %p763_p5 = pnand %p762_p4, %p756_p1 }
  0x2d   :  { %766 = shalt.err (!%p763_p5)  }
  0x2e   :  { %63 = dma.hbm_to_vmem [thread:$0]  %s50_s0, 2048, %s61_s29, [#allocation3 + $0x1]  ;;  %v880_v2 = vld [vmem:[#allocation4] sm:$0xff] }
  0x2f   :  { %s64_s9 = scalar_lea.hbm %s966_s2, 4096  ;;  %s829_s10 = smov [#allocation2 + $0x100]  }
  0x30   :  { %s74_s11 = sshll.u32 %s829_s10, 4  ;;  %s75_s11 = int_to_ptr.vmem [resolvable:$true] %s74_s11 }
  0x31   :  { %s778_s12 = scalar_lea.vmem %s75_s11, 2048  ;;  %p783_p7 = scmp.lt.s32.totalorder %s75_s11, %s862_s27 }
  0x32   :  { %p779_p6 = scmp.ne.s32.totalorder %s75_s11, %s778_s12  ;;  %p784_p8 = scmp.lt.s32.totalorder %s737_s30, %s778_s12 }
  0x34   :  { %p785_p9 = por %p784_p8, %p783_p7 }
  0x36   :  { %p786_p10 = pnand %p785_p9, %p779_p6 }
  0x38   :  { %789 = shalt.err (!%p786_p10)  }
  0x39   :  { %77 = dma.hbm_to_vmem [thread:$0]  %s64_s9, 2048, %s75_s11, [#allocation3 + $0x2] }
  0x3a   :  { %815 = dma.done.wait [#allocation3], 2048 }
  0x3b   :  { %816 = vsyncadd [#allocation3], 4294965248  ;;  %v830_v3 = vmov 0.0   ;;  %vm831_vm1 = vmmov 0   ;;  %v100_v4 = vld [vmem:[#allocation2 + $0x78] sm:$0xff]  ;;  %v99_v5 = vld [vmem:[#allocation2 + $0x70] sm:$0xff] }
  0x3c   :  { %535 = vmatprep.subr.mxu0 %v830_v3  ;;  %567 = vmatprep.mubr.msk.f32.mxu0 %vm831_vm1, %v830_v3  ;;  %v98_v6 = vld [vmem:[#allocation2 + $0x68] sm:$0xff]  ;;  %v97_v7 = vld [vmem:[#allocation2 + $0x60] sm:$0xff]  ;;  %v96_v8 = vld [vmem:[#allocation2 + $0x58] sm:$0xff] }
  0x3d   :  { %536 = vmatpush3.msra.mxu0 %v100_v4  ;;  %v95_v9 = vld [vmem:[#allocation2 + $0x50] sm:$0xff]  ;;  %v94_v10 = vld [vmem:[#allocation2 + $0x48] sm:$0xff]  ;;  %v93_v11 = vld [vmem:[#allocation2 + $0x40] sm:$0xff] }
  0x3e   :  { %537 = vmatprep.subr.mxu0 %v830_v3  ;;  %v92_v12 = vld [vmem:[#allocation2 + $0x38] sm:$0xff]  ;;  %v91_v13 = vld [vmem:[#allocation2 + $0x30] sm:$0xff]  ;;  %v90_v14 = vld [vmem:[#allocation2 + $0x28] sm:$0xff] }
  0x3f   :  { %538 = vmatpush3.msra.mxu0 %v99_v5  ;;  %v89_v15 = vld [vmem:[#allocation2 + $0x20] sm:$0xff]  ;;  %v88_v16 = vld [vmem:[#allocation2 + $0x18] sm:$0xff]  ;;  %v87_v17 = vld [vmem:[#allocation2 + $0x10] sm:$0xff] }
  0x40   :  { %539 = vmatprep.subr.mxu0 %v830_v3  ;;  %v86_v18 = vld [vmem:[#allocation2 + $0x8] sm:$0xff]  ;;  %v85_v19 = vld [vmem:[#allocation2] sm:$0xff] }
  0x41   :  { %540 = vmatpush3.msra.mxu0 %v98_v6  ;;  %v101_v20 = vld [vmem:[#allocation7] sm:$0xff] }
  0x42   :  { %541 = vmatprep.subr.mxu0 %v830_v3 }
  0x43   :  { %542 = vmatpush3.msra.mxu0 %v97_v7 }
  0x44   :  { %543 = vmatprep.subr.mxu0 %v830_v3 }
  0x45   :  { %544 = vmatpush3.msra.mxu0 %v96_v8 }
  0x46   :  { %545 = vmatprep.subr.mxu0 %v830_v3 }
  0x47   :  { %546 = vmatpush3.msra.mxu0 %v95_v9 }
  0x48   :  { %547 = vmatprep.subr.mxu0 %v830_v3 }
  0x49   :  { %548 = vmatpush3.msra.mxu0 %v94_v10 }
  0x4a   :  { %549 = vmatprep.subr.mxu0 %v830_v3 }
  0x4b   :  { %550 = vmatpush3.msra.mxu0 %v93_v11 }
  0x4c   :  { %551 = vmatprep.subr.mxu0 %v830_v3 }
  0x4d   :  { %552 = vmatpush3.msra.mxu0 %v92_v12 }
  0x4e   :  { %553 = vmatprep.subr.mxu0 %v830_v3 }
  0x4f   :  { %554 = vmatpush3.msra.mxu0 %v91_v13 }
  0x50   :  { %555 = vmatprep.subr.mxu0 %v830_v3 }
  0x51   :  { %556 = vmatpush3.msra.mxu0 %v90_v14 }
  0x52   :  { %557 = vmatprep.subr.mxu0 %v830_v3 }
  0x53   :  { %558 = vmatpush3.msra.mxu0 %v89_v15 }
  0x54   :  { %559 = vmatprep.subr.mxu0 %v830_v3 }
  0x55   :  { %560 = vmatpush3.msra.mxu0 %v88_v16 }
  0x56   :  { %561 = vmatprep.subr.mxu0 %v830_v3 }
  0x57   :  { %562 = vmatpush3.msra.mxu0 %v87_v17 }
  0x58   :  { %563 = vmatprep.subr.mxu0 %v830_v3 }
  0x59   :  { %564 = vmatpush3.msra.mxu0 %v86_v18 }
  0x5a   :  { %565 = vmatprep.subr.mxu0 %v830_v3 }
  0x5b   :  { %566 = vmatpush3.msra.mxu0 %v85_v19 }
  0x5c   :  { %568 = vmatmul.mubr.f32.vlgmr.msra.gmra.mxu0 %v880_v2 }
 0x11c   :  { %v168_v21 = vpop.f32.mrf.mxu0 }
 0x11d   :  { %v169_v22 = vadd.f32 %v168_v21, %v101_v20 }
 0x11e   :  { %v569_v23 = vpop.f32.mrf.mxu0 }
 0x11f   :  { %v172_v24 = vmax.f32 %v169_v22, 0.0 }
 0x120   :  { %817 = dma.done.wait [#allocation3 + $0x1], 2048 }
 0x121   :  { %818 = vsyncadd [#allocation3 + $0x1], 4294965248  ;;  %570 = vmatprep.subr.mxu1 %v830_v3  ;;  %602 = vmatprep.mubr.msk.f32.mxu1 %vm831_vm1, %v830_v3  ;;  %v190_v25 = vld [vmem:[#allocation2 + $0xf8] sm:$0xff]  ;;  %v189_v26 = vld [vmem:[#allocation2 + $0xf0] sm:$0xff] }
 0x122   :  { %571 = vmatpush3.msra.mxu1 %v190_v25  ;;  %v188_v27 = vld [vmem:[#allocation2 + $0xe8] sm:$0xff]  ;;  %v187_v28 = vld [vmem:[#allocation2 + $0xe0] sm:$0xff]  ;;  %v186_v29 = vld [vmem:[#allocation2 + $0xd8] sm:$0xff] }
 0x123   :  { %572 = vmatprep.subr.mxu1 %v830_v3  ;;  %v185_v30 = vld [vmem:[#allocation2 + $0xd0] sm:$0xff]  ;;  %v184_v31 = vld [vmem:[#allocation2 + $0xc8] sm:$0xff]  ;;  %v183_v32 = vld [vmem:[#allocation2 + $0xc0] sm:$0xff] }
 0x124   :  { %573 = vmatpush3.msra.mxu1 %v189_v26  ;;  %v182_v33 = vld [vmem:[#allocation2 + $0xb8] sm:$0xff]  ;;  %v181_v34 = vld [vmem:[#allocation2 + $0xb0] sm:$0xff]  ;;  %v180_v35 = vld [vmem:[#allocation2 + $0xa8] sm:$0xff] }
 0x125   :  { %574 = vmatprep.subr.mxu1 %v830_v3  ;;  %v179_v36 = vld [vmem:[#allocation2 + $0xa0] sm:$0xff]  ;;  %v178_v37 = vld [vmem:[#allocation2 + $0x98] sm:$0xff]  ;;  %v177_v38 = vld [vmem:[#allocation2 + $0x90] sm:$0xff] }
 0x126   :  { %575 = vmatpush3.msra.mxu1 %v188_v27  ;;  %v176_v39 = vld [vmem:[#allocation2 + $0x88] sm:$0xff]  ;;  %v175_v40 = vld [vmem:[#allocation2 + $0x80] sm:$0xff]  ;;  %v192_v41 = vld [vmem:[#allocation7 + $0x8] sm:$0xff] }
 0x127   :  { %576 = vmatprep.subr.mxu1 %v830_v3 }
 0x128   :  { %577 = vmatpush3.msra.mxu1 %v187_v28 }
 0x129   :  { %578 = vmatprep.subr.mxu1 %v830_v3 }
 0x12a   :  { %579 = vmatpush3.msra.mxu1 %v186_v29 }
 0x12b   :  { %580 = vmatprep.subr.mxu1 %v830_v3 }
 0x12c   :  { %581 = vmatpush3.msra.mxu1 %v185_v30 }
 0x12d   :  { %582 = vmatprep.subr.mxu1 %v830_v3 }
 0x12e   :  { %583 = vmatpush3.msra.mxu1 %v184_v31 }
 0x12f   :  { %584 = vmatprep.subr.mxu1 %v830_v3 }
 0x130   :  { %585 = vmatpush3.msra.mxu1 %v183_v32 }
 0x131   :  { %586 = vmatprep.subr.mxu1 %v830_v3 }
 0x132   :  { %587 = vmatpush3.msra.mxu1 %v182_v33 }
 0x133   :  { %588 = vmatprep.subr.mxu1 %v830_v3 }
 0x134   :  { %589 = vmatpush3.msra.mxu1 %v181_v34 }
 0x135   :  { %590 = vmatprep.subr.mxu1 %v830_v3 }
 0x136   :  { %591 = vmatpush3.msra.mxu1 %v180_v35 }
 0x137   :  { %592 = vmatprep.subr.mxu1 %v830_v3 }
 0x138   :  { %593 = vmatpush3.msra.mxu1 %v179_v36 }
 0x139   :  { %594 = vmatprep.subr.mxu1 %v830_v3 }
 0x13a   :  { %595 = vmatpush3.msra.mxu1 %v178_v37 }
 0x13b   :  { %596 = vmatprep.subr.mxu1 %v830_v3 }
 0x13c   :  { %597 = vmatpush3.msra.mxu1 %v177_v38 }
 0x13d   :  { %598 = vmatprep.subr.mxu1 %v830_v3 }
 0x13e   :  { %599 = vmatpush3.msra.mxu1 %v176_v39 }
 0x13f   :  { %600 = vmatprep.subr.mxu1 %v830_v3 }
 0x140   :  { %601 = vmatpush3.msra.mxu1 %v175_v40 }
 0x141   :  { %603 = vmatmul.mubr.f32.vlgmr.msra.gmra.mxu1 %v172_v24 }
 0x201   :  { %v259_v42 = vpop.f32.mrf.mxu1 }
 0x202   :  { %v260_v43 = vadd.f32 %v259_v42, %v192_v41 }
 0x203   :  { %v604_v44 = vpop.f32.mrf.mxu1 }
 0x204   :  { %v922_v45 = vsel %vm81_vm0, %v169_v22, %v260_v43 }
 0x205   :  { %819 = dma.done.wait [#allocation3 + $0x2], 2048 }
 0x206   :  { %820 = vsyncadd [#allocation3 + $0x2], 4294965248  ;;  %605 = vmatprep.subr.mxu0 %v830_v3  ;;  %637 = vmatprep.mubr.msk.f32.mxu0 %vm831_vm1, %v830_v3  ;;  %v281_v46 = vld [vmem:[#allocation2 + $0x178] sm:$0xff]  ;;  %v280_v47 = vld [vmem:[#allocation2 + $0x170] sm:$0xff]  ;;  %s832_s2 = smov [#allocation9]  }
 0x207   :  { %640 = vmatprep.subr.mxu1 %v830_v3  ;;  %672 = vmatprep.mubr.msk.f32.mxu1 %vm831_vm1, %v830_v3  ;;  %v279_v48 = vld [vmem:[#allocation2 + $0x168] sm:$0xff]  ;;  %v278_v49 = vld [vmem:[#allocation2 + $0x160] sm:$0xff]  ;;  %v277_v50 = vld [vmem:[#allocation2 + $0x158] sm:$0xff]  ;;  %s434_s13 = sshll.u32 %s832_s2, 4  ;;  %s435_s13 = int_to_ptr.vmem [resolvable:$true] %s434_s13 }
 0x208   :  { %606 = vmatpush3.msra.mxu0 %v281_v46  ;;  %641 = vmatpush3.msra.mxu1 %v281_v46  ;;  %v276_v51 = vld [vmem:[#allocation2 + $0x150] sm:$0xff]  ;;  %v275_v52 = vld [vmem:[#allocation2 + $0x148] sm:$0xff]  ;;  %v274_v53 = vld [vmem:[#allocation2 + $0x140] sm:$0xff]  ;;  %s791_s14 = scalar_lea.vmem %s435_s13, 128  ;;  %p796_p12 = scmp.lt.s32.totalorder %s435_s13, %s435_s13 }
 0x209   :  { %607 = vmatprep.subr.mxu0 %v830_v3  ;;  %642 = vmatprep.subr.mxu1 %v830_v3  ;;  %v273_v54 = vld [vmem:[#allocation2 + $0x138] sm:$0xff]  ;;  %v272_v55 = vld [vmem:[#allocation2 + $0x130] sm:$0xff]  ;;  %v271_v56 = vld [vmem:[#allocation2 + $0x128] sm:$0xff]  ;;  %p792_p11 = scmp.ne.s32.totalorder %s435_s13, %s791_s14  ;;  %p797_p13 = scmp.lt.s32.totalorder %s791_s14, %s791_s14 }
 0x20a   :  { %608 = vmatpush3.msra.mxu0 %v280_v47  ;;  %643 = vmatpush3.msra.mxu1 %v280_v47  ;;  %v270_v57 = vld [vmem:[#allocation2 + $0x120] sm:$0xff]  ;;  %v269_v58 = vld [vmem:[#allocation2 + $0x118] sm:$0xff]  ;;  %v268_v59 = vld [vmem:[#allocation2 + $0x110] sm:$0xff] }
 0x20b   :  { %609 = vmatprep.subr.mxu0 %v830_v3  ;;  %644 = vmatprep.subr.mxu1 %v830_v3  ;;  %v267_v60 = vld [vmem:[#allocation2 + $0x108] sm:$0xff]  ;;  %v266_v61 = vld [vmem:[#allocation2 + $0x100] sm:$0xff]  ;;  %v283_v62 = vld [vmem:[#allocation7 + $0x10] sm:$0xff]  ;;  %p798_p0 = por %p797_p13, %p796_p12 }
 0x20c   :  { %610 = vmatpush3.msra.mxu0 %v279_v48  ;;  %645 = vmatpush3.msra.mxu1 %v279_v48  ;;  %v356_v4 = vld [vmem:[#allocation7 + $0x18] sm:$0xff] }
 0x20d   :  { %611 = vmatprep.subr.mxu0 %v830_v3  ;;  %646 = vmatprep.subr.mxu1 %v830_v3  ;;  %p799_p1 = pnand %p798_p0, %p792_p11 }
 0x20e   :  { %612 = vmatpush3.msra.mxu0 %v278_v49  ;;  %647 = vmatpush3.msra.mxu1 %v278_v49 }
 0x20f   :  { %613 = vmatprep.subr.mxu0 %v830_v3  ;;  %648 = vmatprep.subr.mxu1 %v830_v3 }
 0x210   :  { %614 = vmatpush3.msra.mxu0 %v277_v50  ;;  %649 = vmatpush3.msra.mxu1 %v277_v50 }
 0x211   :  { %615 = vmatprep.subr.mxu0 %v830_v3  ;;  %650 = vmatprep.subr.mxu1 %v830_v3 }
 0x212   :  { %616 = vmatpush3.msra.mxu0 %v276_v51  ;;  %651 = vmatpush3.msra.mxu1 %v276_v51 }
 0x213   :  { %617 = vmatprep.subr.mxu0 %v830_v3  ;;  %652 = vmatprep.subr.mxu1 %v830_v3 }
 0x214   :  { %618 = vmatpush3.msra.mxu0 %v275_v52  ;;  %653 = vmatpush3.msra.mxu1 %v275_v52 }
 0x215   :  { %619 = vmatprep.subr.mxu0 %v830_v3  ;;  %654 = vmatprep.subr.mxu1 %v830_v3 }
 0x216   :  { %620 = vmatpush3.msra.mxu0 %v274_v53  ;;  %655 = vmatpush3.msra.mxu1 %v274_v53 }
 0x217   :  { %621 = vmatprep.subr.mxu0 %v830_v3  ;;  %656 = vmatprep.subr.mxu1 %v830_v3 }
 0x218   :  { %622 = vmatpush3.msra.mxu0 %v273_v54  ;;  %657 = vmatpush3.msra.mxu1 %v273_v54 }
 0x219   :  { %623 = vmatprep.subr.mxu0 %v830_v3  ;;  %658 = vmatprep.subr.mxu1 %v830_v3 }
 0x21a   :  { %624 = vmatpush3.msra.mxu0 %v272_v55  ;;  %659 = vmatpush3.msra.mxu1 %v272_v55 }
 0x21b   :  { %625 = vmatprep.subr.mxu0 %v830_v3  ;;  %660 = vmatprep.subr.mxu1 %v830_v3 }
 0x21c   :  { %626 = vmatpush3.msra.mxu0 %v271_v56  ;;  %661 = vmatpush3.msra.mxu1 %v271_v56 }
 0x21d   :  { %627 = vmatprep.subr.mxu0 %v830_v3  ;;  %662 = vmatprep.subr.mxu1 %v830_v3 }
 0x21e   :  { %628 = vmatpush3.msra.mxu0 %v270_v57  ;;  %663 = vmatpush3.msra.mxu1 %v270_v57 }
 0x21f   :  { %629 = vmatprep.subr.mxu0 %v830_v3  ;;  %664 = vmatprep.subr.mxu1 %v830_v3 }
 0x220   :  { %630 = vmatpush3.msra.mxu0 %v269_v58  ;;  %665 = vmatpush3.msra.mxu1 %v269_v58 }
 0x221   :  { %631 = vmatprep.subr.mxu0 %v830_v3  ;;  %666 = vmatprep.subr.mxu1 %v830_v3 }
 0x222   :  { %632 = vmatpush3.msra.mxu0 %v268_v59  ;;  %667 = vmatpush3.msra.mxu1 %v268_v59 }
 0x223   :  { %633 = vmatprep.subr.mxu0 %v830_v3  ;;  %668 = vmatprep.subr.mxu1 %v830_v3 }
 0x224   :  { %634 = vmatpush3.msra.mxu0 %v267_v60  ;;  %669 = vmatpush3.msra.mxu1 %v267_v60 }
 0x225   :  { %635 = vmatprep.subr.mxu0 %v830_v3  ;;  %670 = vmatprep.subr.mxu1 %v830_v3 }
 0x226   :  { %636 = vmatpush3.msra.mxu0 %v266_v61  ;;  %671 = vmatpush3.msra.mxu1 %v266_v61 }
 0x227   :  { %638 = vmatmul.mubr.f32.vlgmr.msra.gmra.mxu0 %v922_v45 }
 0x2e7   :  { %v350_v63 = vpop.f32.mrf.mxu0 }
 0x2e8   :  { %v351_v0 = vadd.f32 %v350_v63, %v283_v62 }
 0x2e9   :  { %v639_v1 = vpop.f32.mrf.mxu0 }
 0x2ea   :  { %v354_v2 = vmax.f32 %v351_v0, 0.0 }
 0x2ec   :  { %673 = vmatmul.mubr.f32.vlgmr.msra.gmra.mxu1 %v354_v2 }
 0x3ac   :  { %v423_v5 = vpop.f32.mrf.mxu1 }
 0x3ad   :  { %v424_v6 = vadd.f32 %v423_v5, %v356_v4 }
 0x3ae   :  { %v674_v7 = vpop.f32.mrf.mxu1 }
 0x3af   :  { %427 = vst [vmem:[#allocation9] sm:$0xff] %v424_v6 }
 0x3b0   :  { %802 = shalt.err (!%p799_p1)
}
 0x3b1   :  { %437 = dma.vmem_to_hbm [thread:$0]  %s435_s13, 128, %s967_s3, [#allocation6]  }
 0x3b2   :  { %821 = dma.done.wait [#allocation6], 128  }
 0x3b3   :  { %822 = vsyncadd [#allocation6], 4294967168 }
 0x3b4   :  { %441 = vsyncpa [#allocation5], 1 }
 0x3b5   :  { %442 = vsyncpa [#allocation8], 1 }
 0x3b6   :  { %443 = vsyncpa [#allocation6], 1 }
 0x3b7   :  { %444 = vsyncmov [#allocation3] }
 0x3ba   :  { %s445_s17 = vpop.sfrf %444 }
 0x3bb   :  { %p464_p2 = scmp.ne.s32.totalorder %s445_s17, 0 }
 0x3bd   :  { %449 = shalt.err (%p464_p2)  }
 0x3be   :  { %451 = vsyncmov [#allocation3 + $0x1] }
 0x3c1   :  { %s452_s18 = vpop.sfrf %451 }
 0x3c2   :  { %p465_p3 = scmp.ne.s32.totalorder %s452_s18, 0 }
 0x3c4   :  { %456 = shalt.err (%p465_p3)  }
 0x3c5   :  { %458 = vsyncmov [#allocation3 + $0x2] }
 0x3c8   :  { %s459_s19 = vpop.sfrf %458 }
 0x3c9   :  { %p466_p4 = scmp.ne.s32.totalorder %s459_s19, 0 }
 0x3cb   :  { %463 = shalt.err (%p466_p4)  }

</bundles_post_ra>
